<compile_context>
chip_gen: v7x
topology: tpu7x:2x2x1
jax: 0.10.0
libtpu: 0.0.40
codegen_flags: <defaults>
</compile_context>

<pallas_src>
import math

import jax
import jax.numpy as jnp
from jax.experimental import pallas as pl
from jax.experimental.pallas import tpu as pltpu

_TILE_CAP_BYTES = 2 * 1024 * 1024   # ~2 MiB/tile: ~85% HBM roofline, v7x-safe
_MAX_SLAB_LANES = 32768             # upper bound on lane-dense slab width


def _copy_kernel(x_ref, o_ref):
    # Pure 2D tile copy: identical in/out block shapes, plain vld/vst,
    # no cross-lane (XLU) relayout work.
    o_ref[...] = x_ref[...]


def _native_sublanes(itemsize: int) -> int:
    # f32 -> 8, bf16/f16 -> 16, int8/fp8 -> 32 (native packed tile heights).
    return max(8, 32 // itemsize)


def _pick_slab(total: int):
    """Largest lane-dense slab (rows, L): L multiple of 128 dividing total."""
    if total <= 0 or total % 128 != 0:
        return 0, 0
    base = total // 128
    kmax = min(_MAX_SLAB_LANES // 128, base)
    for k in range(kmax, 0, -1):
        if base % k == 0:
            lanes = 128 * k
            return total // lanes, lanes
    return total // 128, 128


def _pick_tiles(rows: int, cols: int, itemsize: int):
    """Lane-dense, dtype-aware tiles capped at ~_TILE_CAP_BYTES per tile."""
    sub = _native_sublanes(itemsize)
    # Lane tile: multiple of 128 when the array is lane aligned, else full dim
    # (a block equal to the full array dim is always legal).
    if cols % 128 == 0:
        max_c = max(128, (_TILE_CAP_BYTES // (itemsize * sub)) // 128 * 128)
        tile_c = min(cols, max_c)
    else:
        tile_c = cols
    # Sublane tile: grow in multiples of the native sublane count up to cap.
    per_row_bytes = max(1, tile_c * itemsize)
    max_r = max(sub, (_TILE_CAP_BYTES // per_row_bytes) // sub * sub)
    tile_r = rows if rows <= max_r else max_r
    return tile_r, tile_c


def _maybe_split_for_megacore(rows, cols, tile_r, tile_c, itemsize):
    """Ensure >=2 grid steps for large inputs so v7x's 2nd TC gets work."""
    total_bytes = rows * cols * itemsize
    if total_bytes < (1 << 20):
        return tile_r, tile_c
    if pl.cdiv(rows, tile_r) >= 2 or pl.cdiv(cols, tile_c) >= 2:
        return tile_r, tile_c
    sub = _native_sublanes(itemsize)
    if rows >= 2 * sub:
        tile_r = max(sub, (rows // 2 // sub) * sub)
    elif cols % 256 == 0 and cols >= 256:
        tile_c = cols // 2
    return tile_r, tile_c


def flatten(x: jax.Array) -> jax.Array:
    """Pallas equivalent of Flatten.forward: (B, ...) -> (B, prod(...))."""
    b = x.shape[0]
    flat = math.prod(x.shape[1:]) if x.ndim > 1 else 1
    total = b * flat
    itemsize = jnp.dtype(x.dtype).itemsize

    # Free metadata reshape into the copy layout (lane-dense slab if possible).
    rows, lanes = _pick_slab(total)
    if lanes == 0:
        rows, lanes = b, flat
    x2d = jnp.reshape(x, (rows, lanes))

    tile_r, tile_c = _pick_tiles(rows, lanes, itemsize)
    tile_r, tile_c = _maybe_split_for_megacore(rows, lanes, tile_r, tile_c, itemsize)
    grid = (pl.cdiv(rows, tile_r), pl.cdiv(lanes, tile_c))

    # VMEM budget: 2 buffers x (in tile + out tile) = 4 x tile bytes, +25%
    # headroom; floor keeps the compiler's internal scratch comfortable.
    tile_bytes = tile_r * tile_c * itemsize
    vmem_limit = max(8 * 1024 * 1024, int(4 * tile_bytes * 1.25))

    y2d = pl.pallas_call(
        _copy_kernel,
        out_shape=jax.ShapeDtypeStruct((rows, lanes), x.dtype),
        grid_spec=pltpu.PrefetchScalarGridSpec(
            num_scalar_prefetch=0,
            grid=grid,
            in_specs=[pl.BlockSpec((tile_r, tile_c), lambda i, j: (i, j))],
            out_specs=pl.BlockSpec((tile_r, tile_c), lambda i, j: (i, j)),
        ),
        compiler_params=pltpu.CompilerParams(
            dimension_semantics=("parallel", "parallel"),
            vmem_limit_bytes=vmem_limit,
        ),
        cost_estimate=pl.CostEstimate(
            flops=0,
            transcendentals=0,
            bytes_accessed=2 * total * itemsize,
        ),
    )(x2d)

    # Free metadata reshape back to the Flatten output shape.
    return jnp.reshape(y2d, (b, flat))


if __name__ == "__main__":
    key = jax.random.PRNGKey(0)

    # Small NCHW input consistent with a YOLOv8-style feature map.
    B, C, H, W = 2, 4, 16, 16
    x = jax.random.normal(key, (B, C, H, W), dtype=jnp.float32)

    y = flatten(x)
    y = jax.block_until_ready(y)

    ref = jnp.reshape(x, (B, -1))
    assert y.shape == (B, C * H * W), y.shape
    assert y.dtype == x.dtype, y.dtype
    assert bool(jnp.array_equal(y, ref)), "Flatten kernel mismatch vs reference"

    # Exercise the non-lane-dense fallback path with a sub-32-bit dtype.
    x2 = jax.random.normal(key, (4, 3, 5, 7), dtype=jnp.bfloat16)
    y2 = jax.block_until_ready(flatten(x2))
    ref2 = jnp.reshape(x2, (4, -1))
    assert y2.shape == (4, 3 * 5 * 7), y2.shape
    assert bool(jnp.array_equal(y2, ref2)), "Flatten kernel mismatch (bf16 fallback)"

    print("KERNEL_OK")
</pallas_src>

<mosaic_0001>
module attributes {stable_mosaic.version = 11 : i64} {
  func.func @_copy_kernel(%arg0: i32, %arg1: i32, %arg2: memref<1x2048xf32, #tpu.memory_space<vmem>>, %arg3: memref<1x2048xf32, #tpu.memory_space<vmem>>) attributes {dimension_semantics = [#tpu.dimension_semantics<parallel>, #tpu.dimension_semantics<parallel>], iteration_bounds = array<i64: 1, 1>, scalar_prefetch = 0 : i64, scratch_operands = 0 : i64, tpu.core_type = #tpu.core_type<tc>, window_params = [{transform_indices = @transform_0, window_bounds = array<i64: 1, 2048>}, {transform_indices = @transform_1, window_bounds = array<i64: 1, 2048>}]} {
    %c0 = arith.constant 0 : index
    %c0_0 = arith.constant 0 : index
    %0 = vector.load %arg2[%c0, %c0_0] : memref<1x2048xf32, #tpu.memory_space<vmem>>, vector<1x2048xf32>
    %c0_1 = arith.constant 0 : index
    %c0_2 = arith.constant 0 : index
    %1 = vector.load %arg3[%c0_1, %c0_2] : memref<1x2048xf32, #tpu.memory_space<vmem>>, vector<1x2048xf32>
    tpu.vector_store %arg3[%c0_1, %c0_2], %0 {strides = array<i32>} : memref<1x2048xf32, #tpu.memory_space<vmem>>, vector<1x2048xf32>,
    return
  }
  func.func @transform_0(%arg0: i32, %arg1: i32) -> (i32, i32) {
    %c0_i32 = arith.constant 0 : i32
    return %arg0, %arg1 : i32, i32
  }
  func.func @transform_1(%arg0: i32, %arg1: i32) -> (i32, i32) {
    %c0_i32 = arith.constant 0 : i32
    return %arg0, %arg1 : i32, i32
  }
}

</mosaic_0001>

<bundles_post_ra>
// kernel: tpu_custom_call.1
= control target key start
LH: loop header
LB: loop body
LE: loop exit
PB: predicated region body
PF: predicated region fallthrough
CT: control target
= control target key end

     0   :  { %6 = vsyncpa [#allocation3], 0  ;;  %s126_s0 = inlined_call_operand.hbm [shape: f32[1,2048], index: 0, kind: input, shape index: {}]   ;;  %s127_s1 = inlined_call_operand.hbm [shape: f32[1,2048], index: 1, kind: output, shape index: {}]  }
   0x1   :  { %7 = vsyncpa [#allocation4], 0  ;;  %s90_s6 = smov [#allocation2]   ;;  %s42_s10 = scalar_lea.hbm %s126_s0, 256 }
   0x2   :  { %s14_s7 = sshll.u32 %s90_s6, 4  ;;  %p43_p0 = scmp.ne.s32.totalorder %s126_s0, %s42_s10  ;;  %s15_s7 = int_to_ptr.vmem [resolvable:$true] %s14_s7 }
   0x3   :  { %p46_p1 = scmp.lt.u32.totalorder %s42_s10, %s126_s0 }
   0x5   :  { %p48_p2 = pnand %p46_p1, %p43_p0 }
   0x7   :  { %51 = shalt.err (!%p48_p2)
}
   0x8   :  { %s52_s15 = scalar_lea.vmem %s15_s7, 256  ;;  %p57_p4 = scmp.lt.s32.totalorder %s15_s7, %s15_s7 }
   0x9   :  { %p53_p3 = scmp.ne.s32.totalorder %s15_s7, %s52_s15  ;;  %p58_p5 = scmp.lt.s32.totalorder %s52_s15, %s52_s15 }
   0xb   :  { %p59_p6 = por %p58_p5, %p57_p4 }
   0xd   :  { %p60_p7 = pnand %p59_p6, %p53_p3 }
   0xf   :  { %63 = shalt.err (!%p60_p7)
}
  0x10   :  { %17 = dma.hbm_to_vmem [thread:$0]  %s126_s0, 256, %s15_s7, [#allocation3]  }
  0x11   :  { %86 = dma.done.wait [#allocation3], 256  }
  0x12   :  { %87 = vsyncadd [#allocation3], 4294967040  ;;  %s91_s18 = smov [#allocation5]   ;;  %v21_v0 = vld [vmem:[#allocation2] sm:$0xff]  ;;  %v22_v1 = vld [vmem:[#allocation2 + $0x8] sm:$0xff] }
  0x13   :  { %s31_s19 = sshll.u32 %s91_s18, 4  ;;  %23 = vst [vmem:[#allocation5] sm:$0xff] %v21_v0  ;;  %24 = vst [vmem:[#allocation5 + $0x8] sm:$0xff] %v22_v1  ;;  %s32_s19 = int_to_ptr.vmem [resolvable:$true] %s31_s19 }
  0x14   :  { %s64_s20 = scalar_lea.vmem %s32_s19, 256  ;;  %p69_p9 = scmp.lt.s32.totalorder %s32_s19, %s32_s19 }
  0x15   :  { %p65_p8 = scmp.ne.s32.totalorder %s32_s19, %s64_s20  ;;  %p70_p10 = scmp.lt.s32.totalorder %s64_s20, %s64_s20 }
  0x17   :  { %p71_p11 = por %p70_p10, %p69_p9 }
  0x19   :  { %p72_p12 = pnand %p71_p11, %p65_p8 }
  0x1b   :  { %75 = shalt.err (!%p72_p12)
}
  0x1c   :  { %s76_s0 = scalar_lea.hbm %s127_s1, 256 }
  0x1d   :  { %p77_p13 = scmp.ne.s32.totalorder %s127_s1, %s76_s0  ;;  %p80_p0 = scmp.lt.u32.totalorder %s76_s0, %s127_s1 }
  0x1f   :  { %p82_p1 = pnand %p80_p0, %p77_p13 }
  0x21   :  { %85 = shalt.err (!%p82_p1)
}
  0x22   :  { %34 = dma.vmem_to_hbm [thread:$0]  %s32_s19, 256, %s127_s1, [#allocation4]  }
  0x23   :  { %88 = dma.done.wait [#allocation4], 256  }
  0x24   :  { %89 = vsyncadd [#allocation4], 4294967040 }
  0x25   :  { %38 = vsyncpa [#allocation3], 1 }
  0x26   :  { %39 = vsyncpa [#allocation4], 1 }

</bundles_post_ra>
